<compile_context>
chip_gen: v7x
topology: tpu7x:2x2x1
jax: 0.10.0
libtpu: 0.0.40
codegen_flags: <defaults>
</compile_context>

<pallas_src>
import functools

import jax
import jax.numpy as jnp
from jax.experimental import pallas as pl
from jax.experimental.pallas import tpu as pltpu


def _round_up(x, m):
    return (x + m - 1) // m * m


def _d4pg_critic_kernel(hidden,
                        xa_ref, wcat_ref, b1_ref,
                        w2o_ref, b2_ref,
                        w3_ref, b3_ref, atoms_ref,
                        out_ref, ev_ref):
    # Fused first layer: [x | a] @ blockdiag(W1, W2_act) in a single MXU pass.
    fused = jnp.dot(xa_ref[...], wcat_ref[...],
                    preferred_element_type=jnp.float32)        # (TB, HIDDEN+HIDDEN2)

    # obs_net: Linear + ReLU (first HIDDEN lanes of the fused result).
    h1 = jnp.maximum(fused[:, :hidden] + b1_ref[...], 0.0)
    # a @ W2_act (remaining lanes), consumed directly by the second layer.
    a_part = fused[:, hidden:]

    # v_net[0]: Linear(HIDDEN + output_size, HIDDEN2) + ReLU.
    h2 = jnp.maximum(
        jnp.dot(h1.astype(jnp.bfloat16), w2o_ref[...],
                preferred_element_type=jnp.float32) + a_part + b2_ref[...], 0.0)

    # v_net[2]: Linear(HIDDEN2, n_atoms), lane-dense padded to 128 columns.
    # Padded columns of b3 hold -1e30, so they arrive pre-masked for the softmax.
    logits = jnp.dot(h2.astype(jnp.bfloat16), w3_ref[...],
                     preferred_element_type=jnp.float32) + b3_ref[...]
    out_ref[...] = logits.astype(out_ref.dtype)

    # Fused get_expected_v: softmax over atoms * support (padded cols contribute 0).
    m = jnp.max(logits, axis=1, keepdims=True)
    p = jnp.exp(logits - m)                            # EUP
    denom = jnp.sum(p, axis=1, keepdims=True)          # XLU
    probs = p * pl.reciprocal(denom, approx=True)      # EUP approx vrcp (~1e-3 rel)
    # TODO(synk): ev is a 1-lane output (masked vst); widen only if it shows in profile.
    ev_ref[...] = jnp.sum(probs * atoms_ref[...], axis=1, keepdims=True)


def d4pg_critic_forward(x, a, params, *, hidden, n_atoms, tile_b=2048,
                        logits_dtype=jnp.float32):
    """x: (B, input_size) f32, a: (B, output_size) f32
       -> (logits (B, n_atoms), expected_v (B, 1) f32)."""
    wcat, b1, w2o, b2, w3p, b3p, atoms_p = params
    B = x.shape[0]
    n_pad = w3p.shape[1]

    # One fused wrapper op: concat [x | a] AND cast to bf16 (same HBM bytes as
    # the cast alone) -- the kernel's first matmul needs them adjacent on K.
    xa = jnp.concatenate([x, a], axis=1).astype(jnp.bfloat16)

    # Tile selection: multiple of 8 (block constraint), large enough to amortize
    # per-step pipeline overhead, capped so the grid keeps >= 2 steps whenever
    # the batch allows it (v7x megacore sharding of the "parallel" axis).
    tile_b = max(8, (min(int(tile_b), 4096) // 8) * 8)
    tile_b = min(tile_b, max(8, _round_up(pl.cdiv(B, 2), 8)))
    grid = (pl.cdiv(B, tile_b),)   # ragged last block handled by Pallas; no jnp.pad

    def batch_spec(feat):
        return pl.BlockSpec((tile_b, feat), lambda i: (i, 0))

    def resident(arr):
        # Whole array as one block, same block every step -> VMEM-resident.
        return pl.BlockSpec(arr.shape, lambda i: (0, 0))

    logits_pad, ev = pl.pallas_call(
        functools.partial(_d4pg_critic_kernel, hidden),
        out_shape=(jax.ShapeDtypeStruct((B, n_pad), logits_dtype),
                   jax.ShapeDtypeStruct((B, 1), jnp.float32)),
        grid=grid,
        in_specs=[batch_spec(xa.shape[1]),
                  resident(wcat), resident(b1),
                  resident(w2o), resident(b2),
                  resident(w3p), resident(b3p), resident(atoms_p)],
        out_specs=(batch_spec(n_pad),
                   pl.BlockSpec((tile_b, 1), lambda i: (i, 0))),
        compiler_params=pltpu.CompilerParams(
            dimension_semantics=("parallel",),
            vmem_limit_bytes=64 * 1024 * 1024),  # v5e scoped default is only 16 MiB
    )(xa, wcat, b1, w2o, b2, w3p, b3p, atoms_p)

    return logits_pad[:, :n_atoms], ev


def init_params(key, input_size, output_size, n_atoms, hidden, hidden2, n_pad,
                v_min, v_max):
    """Deterministic init mimicking nn.Linear default (uniform +-1/sqrt(fan_in)).
    Weights stored as (in, out) bf16, biases f32.  W1 and W2_act are packed into
    one block-diagonal matrix; the final layer is zero-padded to n_pad lanes and
    its bias padded with -1e30 so padded logits are softmax-masked for free."""
    ks = jax.random.split(key, 6)

    def lin(kw, kb, fan_in, fan_out):
        bound = float(fan_in) ** -0.5
        w = jax.random.uniform(kw, (fan_in, fan_out), jnp.float32, -bound, bound)
        b = jax.random.uniform(kb, (1, fan_out), jnp.float32, -bound, bound)
        return w, b

    w1, b1 = lin(ks[0], ks[1], input_size, hidden)
    w2, b2 = lin(ks[2], ks[3], hidden + output_size, hidden2)
    w3, b3 = lin(ks[4], ks[5], hidden2, n_atoms)
    w2o, w2a = w2[:hidden, :], w2[hidden:, :]

    # Block-diagonal fused first-layer weight: [x | a] @ Wcat == [x@W1 | a@W2_act].
    wcat = jnp.zeros((input_size + output_size, hidden + hidden2), jnp.float32)
    wcat = wcat.at[:input_size, :hidden].set(w1)
    wcat = wcat.at[input_size:, hidden:].set(w2a)

    # Lane-dense final layer: zero-pad W3 columns; bias padded with -1e30 so the
    # fused softmax needs no in-kernel mask (padded cols exp() to 0).
    w3p = jnp.pad(w3, ((0, 0), (0, n_pad - n_atoms)))
    b3p = jnp.pad(b3, ((0, 0), (0, n_pad - n_atoms)), constant_values=-1e30)

    # support_atoms buffer (linspace avoids the arange float-step 52-element bug).
    support = jnp.linspace(v_min, v_max, n_atoms, dtype=jnp.float32)
    atoms_p = jnp.pad(support[None, :], ((0, 0), (0, n_pad - n_atoms)))

    params = (wcat.astype(jnp.bfloat16), b1,
              w2o.astype(jnp.bfloat16), b2,
              w3p.astype(jnp.bfloat16), b3p, atoms_p)
    return params, support


def reference_forward(x, a, params, hidden, n_atoms):
    """Plain-JAX reference using the same bf16-weight / f32-accumulate math."""
    wcat, b1, w2o, b2, w3p, b3p, _ = params
    f32 = jnp.float32
    xa = jnp.concatenate([x, a], axis=1).astype(jnp.bfloat16)
    fused = jnp.dot(xa, wcat, preferred_element_type=f32)
    h1 = jnp.maximum(fused[:, :hidden] + b1, 0.0)
    a_part = fused[:, hidden:]
    h2 = jnp.maximum(
        jnp.dot(h1.astype(jnp.bfloat16), w2o, preferred_element_type=f32)
        + a_part + b2, 0.0)
    logits = jnp.dot(h2.astype(jnp.bfloat16), w3p, preferred_element_type=f32) + b3p
    return logits[:, :n_atoms]


if __name__ == "__main__":
    # Small shapes consistent with the module's forward signature.
    B = 40              # not a tile multiple -> exercises the ragged last block
    input_size = 16     # observation dim
    output_size = 4     # action dim
    HIDDEN, HIDDEN2 = 128, 128   # constructor args (module defaults are 400/300)
    n_atoms = 51
    N_PAD = 128         # lane-dense padded atom dimension
    v_min, v_max = -10.0, 10.0

    key = jax.random.PRNGKey(0)
    kx, ka, kp = jax.random.split(key, 3)
    x = jax.random.normal(kx, (B, input_size), jnp.float32)
    a = jax.random.normal(ka, (B, output_size), jnp.float32)
    params, support = init_params(kp, input_size, output_size, n_atoms,
                                  HIDDEN, HIDDEN2, N_PAD, v_min, v_max)

    ref_logits = reference_forward(x, a, params, HIDDEN, n_atoms)

    def check(logits, expected_v):
        assert logits.shape == (B, n_atoms)
        assert expected_v.shape == (B, 1)
        assert jnp.allclose(logits, ref_logits, atol=2e-3, rtol=2e-3), \
            "logits mismatch vs. reference"
        ev_ref = (jax.nn.softmax(logits.astype(jnp.float32), axis=1)
                  * support).sum(axis=1, keepdims=True)
        assert jnp.allclose(expected_v, ev_ref, atol=1e-2), "expected_v mismatch"

    # Small explicit tile: grid of 3 steps with a ragged (8-row) tail block.
    logits, expected_v = d4pg_critic_forward(x, a, params, hidden=HIDDEN,
                                             n_atoms=n_atoms, tile_b=16)
    logits, expected_v = jax.block_until_ready((logits, expected_v))
    check(logits, expected_v)

    # Default tile path: clamps to a >=2-step grid (24-row blocks for B=40).
    logits2, expected_v2 = d4pg_critic_forward(x, a, params, hidden=HIDDEN,
                                               n_atoms=n_atoms)
    logits2, expected_v2 = jax.block_until_ready((logits2, expected_v2))
    check(logits2, expected_v2)

    print("KERNEL_OK")
</pallas_src>

<mosaic_0001>
module attributes {stable_mosaic.version = 11 : i64} {
  func.func @_d4pg_critic_kernel(%arg0: i32, %arg1: memref<16x20xbf16, #tpu.memory_space<vmem>>, %arg2: memref<20x256xbf16, #tpu.memory_space<vmem>>, %arg3: memref<1x128xf32, #tpu.memory_space<vmem>>, %arg4: memref<128x128xbf16, #tpu.memory_space<vmem>>, %arg5: memref<1x128xf32, #tpu.memory_space<vmem>>, %arg6: memref<128x128xbf16, #tpu.memory_space<vmem>>, %arg7: memref<1x128xf32, #tpu.memory_space<vmem>>, %arg8: memref<1x128xf32, #tpu.memory_space<vmem>>, %arg9: memref<16x128xf32, #tpu.memory_space<vmem>>, %arg10: memref<16x1xf32, #tpu.memory_space<vmem>>) attributes {dimension_semantics = [#tpu.dimension_semantics<parallel>], iteration_bounds = array<i64: 3>, scalar_prefetch = 0 : i64, scratch_operands = 0 : i64, tpu.core_type = #tpu.core_type<tc>, window_params = [{transform_indices = @transform_0, window_bounds = array<i64: 16, 20>}, {pipeline_mode = #tpu.pipeline_mode<synchronous>, transform_indices = @transform_1, window_bounds = array<i64: 20, 256>}, {pipeline_mode = #tpu.pipeline_mode<synchronous>, transform_indices = @transform_2, window_bounds = array<i64: 1, 128>}, {pipeline_mode = #tpu.pipeline_mode<synchronous>, transform_indices = @transform_3, window_bounds = array<i64: 128, 128>}, {pipeline_mode = #tpu.pipeline_mode<synchronous>, transform_indices = @transform_4, window_bounds = array<i64: 1, 128>}, {pipeline_mode = #tpu.pipeline_mode<synchronous>, transform_indices = @transform_5, window_bounds = array<i64: 128, 128>}, {pipeline_mode = #tpu.pipeline_mode<synchronous>, transform_indices = @transform_6, window_bounds = array<i64: 1, 128>}, {pipeline_mode = #tpu.pipeline_mode<synchronous>, transform_indices = @transform_7, window_bounds = array<i64: 1, 128>}, {transform_indices = @transform_8, window_bounds = array<i64: 16, 128>}, {transform_indices = @transform_9, window_bounds = array<i64: 16, 1>}]} {
    %c0 = arith.constant 0 : index
    %c0_0 = arith.constant 0 : index
    %0 = vector.load %arg1[%c0, %c0_0] : memref<16x20xbf16, #tpu.memory_space<vmem>>, vector<16x20xbf16>
    %c0_1 = arith.constant 0 : index
    %c0_2 = arith.constant 0 : index
    %1 = vector.load %arg2[%c0_1, %c0_2] : memref<20x256xbf16, #tpu.memory_space<vmem>>, vector<20x256xbf16>
    %cst = arith.constant dense<0.000000e+00> : vector<16x256xf32>
    %2 = tpu.matmul %0, %1, %cst {dimension_numbers = #tpu.dot_dimension_numbers<[1], [0], [0], [1], [0, 0, 1, 1], [], []>} : vector<16x20xbf16>, vector<20x256xbf16>, vector<16x256xf32> -> vector<16x256xf32>
    %3 = vector.extract_strided_slice %2 {offsets = [0, 0], sizes = [16, 128], strides = [1, 1]} : vector<16x256xf32> to vector<16x128xf32>
    %c0_3 = arith.constant 0 : index
    %c0_4 = arith.constant 0 : index
    %4 = vector.load %arg3[%c0_3, %c0_4] : memref<1x128xf32, #tpu.memory_space<vmem>>, vector<1x128xf32>
    %5 = vector.broadcast %4 : vector<1x128xf32> to vector<16x128xf32>
    %6 = arith.addf %3, %5 : vector<16x128xf32>
    %cst_5 = arith.constant 0.000000e+00 : f32
    %7 = vector.broadcast %cst_5 : f32 to vector<16x128xf32>
    %8 = arith.maximumf %6, %7 : vector<16x128xf32>
    %9 = vector.extract_strided_slice %2 {offsets = [0, 128], sizes = [16, 128], strides = [1, 1]} : vector<16x256xf32> to vector<16x128xf32>
    %10 = arith.truncf %8 : vector<16x128xf32> to vector<16x128xbf16>
    %c0_6 = arith.constant 0 : index
    %c0_7 = arith.constant 0 : index
    %11 = vector.load %arg4[%c0_6, %c0_7] : memref<128x128xbf16, #tpu.memory_space<vmem>>, vector<128x128xbf16>
    %cst_8 = arith.constant dense<0.000000e+00> : vector<16x128xf32>
    %12 = tpu.matmul %10, %11, %cst_8 {dimension_numbers = #tpu.dot_dimension_numbers<[1], [0], [0], [1], [0, 0, 1, 1], [], []>} : vector<16x128xbf16>, vector<128x128xbf16>, vector<16x128xf32> -> vector<16x128xf32>
    %13 = arith.addf %12, %9 : vector<16x128xf32>
    %c0_9 = arith.constant 0 : index
    %c0_10 = arith.constant 0 : index
    %14 = vector.load %arg5[%c0_9, %c0_10] : memref<1x128xf32, #tpu.memory_space<vmem>>, vector<1x128xf32>
    %15 = vector.broadcast %14 : vector<1x128xf32> to vector<16x128xf32>
    %16 = arith.addf %13, %15 : vector<16x128xf32>
    %cst_11 = arith.constant 0.000000e+00 : f32
    %17 = vector.broadcast %cst_11 : f32 to vector<16x128xf32>
    %18 = arith.maximumf %16, %17 : vector<16x128xf32>
    %19 = arith.truncf %18 : vector<16x128xf32> to vector<16x128xbf16>
    %c0_12 = arith.constant 0 : index
    %c0_13 = arith.constant 0 : index
    %20 = vector.load %arg6[%c0_12, %c0_13] : memref<128x128xbf16, #tpu.memory_space<vmem>>, vector<128x128xbf16>
    %cst_14 = arith.constant dense<0.000000e+00> : vector<16x128xf32>
    %21 = tpu.matmul %19, %20, %cst_14 {dimension_numbers = #tpu.dot_dimension_numbers<[1], [0], [0], [1], [0, 0, 1, 1], [], []>} : vector<16x128xbf16>, vector<128x128xbf16>, vector<16x128xf32> -> vector<16x128xf32>
    %c0_15 = arith.constant 0 : index
    %c0_16 = arith.constant 0 : index
    %22 = vector.load %arg7[%c0_15, %c0_16] : memref<1x128xf32, #tpu.memory_space<vmem>>, vector<1x128xf32>
    %23 = vector.broadcast %22 : vector<1x128xf32> to vector<16x128xf32>
    %24 = arith.addf %21, %23 : vector<16x128xf32>
    %c0_17 = arith.constant 0 : index
    %c0_18 = arith.constant 0 : index
    %25 = vector.load %arg9[%c0_17, %c0_18] : memref<16x128xf32, #tpu.memory_space<vmem>>, vector<16x128xf32>
    tpu.vector_store %arg9[%c0_17, %c0_18], %24 {strides = array<i32>} : memref<16x128xf32, #tpu.memory_space<vmem>>, vector<16x128xf32>,
    %cst_19 = arith.constant dense<0xFF800000> : vector<16xf32>
    %26 = vector.multi_reduction <maximumf>, %24, %cst_19 [1] : vector<16x128xf32> to vector<16xf32>
    %27 = vector.shape_cast %26 : vector<16xf32> to vector<16x1xf32>
    %28 = vector.broadcast %27 : vector<16x1xf32> to vector<16x128xf32>
    %29 = arith.subf %24, %28 : vector<16x128xf32>
    %30 = math.exp %29 : vector<16x128xf32>
    %cst_20 = arith.constant dense<0.000000e+00> : vector<16xf32>
    %31 = vector.multi_reduction <add>, %30, %cst_20 [1] : vector<16x128xf32> to vector<16xf32>
    %32 = vector.shape_cast %31 : vector<16xf32> to vector<16x1xf32>
    %33 = tpu.reciprocal %32 {approx = true} : vector<16x1xf32> -> vector<16x1xf32>
    %34 = vector.broadcast %33 : vector<16x1xf32> to vector<16x128xf32>
    %35 = arith.mulf %30, %34 : vector<16x128xf32>
    %c0_21 = arith.constant 0 : index
    %c0_22 = arith.constant 0 : index
    %36 = vector.load %arg8[%c0_21, %c0_22] : memref<1x128xf32, #tpu.memory_space<vmem>>, vector<1x128xf32>
    %37 = vector.broadcast %36 : vector<1x128xf32> to vector<16x128xf32>
    %38 = arith.mulf %35, %37 : vector<16x128xf32>
    %cst_23 = arith.constant dense<0.000000e+00> : vector<16xf32>
    %39 = vector.multi_reduction <add>, %38, %cst_23 [1] : vector<16x128xf32> to vector<16xf32>
    %40 = vector.shape_cast %39 : vector<16xf32> to vector<16x1xf32>
    %c0_24 = arith.constant 0 : index
    %c0_25 = arith.constant 0 : index
    %41 = vector.load %arg10[%c0_24, %c0_25] : memref<16x1xf32, #tpu.memory_space<vmem>>, vector<16x1xf32>
    tpu.vector_store %arg10[%c0_24, %c0_25], %40 {strides = array<i32>} : memref<16x1xf32, #tpu.memory_space<vmem>>, vector<16x1xf32>,
    return
  }
  func.func @transform_0(%arg0: i32) -> (i32, i32) {
    %c0_i32 = arith.constant 0 : i32
    %c0_i32_0 = arith.constant 0 : i32
    return %arg0, %c0_i32 : i32, i32
  }
  func.func @transform_1(%arg0: i32) -> (i32, i32) {
    %c0_i32 = arith.constant 0 : i32
    %c0_i32_0 = arith.constant 0 : i32
    %c0_i32_1 = arith.constant 0 : i32
    return %c0_i32, %c0_i32_0 : i32, i32
  }
  func.func @transform_2(%arg0: i32) -> (i32, i32) {
    %c0_i32 = arith.constant 0 : i32
    %c0_i32_0 = arith.constant 0 : i32
    %c0_i32_1 = arith.constant 0 : i32
    return %c0_i32, %c0_i32_0 : i32, i32
  }
  func.func @transform_3(%arg0: i32) -> (i32, i32) {
    %c0_i32 = arith.constant 0 : i32
    %c0_i32_0 = arith.constant 0 : i32
    %c0_i32_1 = arith.constant 0 : i32
    return %c0_i32, %c0_i32_0 : i32, i32
  }
  func.func @transform_4(%arg0: i32) -> (i32, i32) {
    %c0_i32 = arith.constant 0 : i32
    %c0_i32_0 = arith.constant 0 : i32
    %c0_i32_1 = arith.constant 0 : i32
    return %c0_i32, %c0_i32_0 : i32, i32
  }
  func.func @transform_5(%arg0: i32) -> (i32, i32) {
    %c0_i32 = arith.constant 0 : i32
    %c0_i32_0 = arith.constant 0 : i32
    %c0_i32_1 = arith.constant 0 : i32
    return %c0_i32, %c0_i32_0 : i32, i32
  }
  func.func @transform_6(%arg0: i32) -> (i32, i32) {
    %c0_i32 = arith.constant 0 : i32
    %c0_i32_0 = arith.constant 0 : i32
    %c0_i32_1 = arith.constant 0 : i32
    return %c0_i32, %c0_i32_0 : i32, i32
  }
  func.func @transform_7(%arg0: i32) -> (i32, i32) {
    %c0_i32 = arith.constant 0 : i32
    %c0_i32_0 = arith.constant 0 : i32
    %c0_i32_1 = arith.constant 0 : i32
    return %c0_i32, %c0_i32_0 : i32, i32
  }
  func.func @transform_8(%arg0: i32) -> (i32, i32) {
    %c0_i32 = arith.constant 0 : i32
    %c0_i32_0 = arith.constant 0 : i32
    return %arg0, %c0_i32 : i32, i32
  }
  func.func @transform_9(%arg0: i32) -> (i32, i32) {
    %c0_i32 = arith.constant 0 : i32
    %c0_i32_0 = arith.constant 0 : i32
    return %arg0, %c0_i32 : i32, i32
  }
}

</mosaic_0001>

<bundles_post_ra>
// kernel: tpu_custom_call.1
= control target key start
LH: loop header
LB: loop body
LE: loop exit
PB: predicated region body
PF: predicated region fallthrough
CT: control target
= control target key end

     0   :  { %s2176_s0 = inlined_call_operand.hbm [shape: bf16[40,20], index: 0, kind: input, shape index: {}]   ;;  %s2177_s1 = inlined_call_operand.hbm [shape: bf16[20,256], index: 1, kind: input, shape index: {}]   ;;  %s2178_s2 = inlined_call_operand.hbm [shape: f32[1,128], index: 2, kind: input, shape index: {}]   ;;  %s2179_s3 = inlined_call_operand.hbm [shape: bf16[128,128], index: 3, kind: input, shape index: {}]   ;;  %s2180_s4 = inlined_call_operand.hbm [shape: f32[1,128], index: 4, kind: input, shape index: {}]   ;;  %s2181_s5 = inlined_call_operand.hbm [shape: bf16[128,128], index: 5, kind: input, shape index: {}]   ;;  %s2182_s6 = inlined_call_operand.hbm [shape: f32[1,128], index: 6, kind: input, shape index: {}]   ;;  %s2183_s7 = inlined_call_operand.hbm [shape: f32[1,128], index: 7, kind: input, shape index: {}]   ;;  %s2184_s8 = inlined_call_operand.hbm [shape: f32[40,128], index: 8, kind: output, shape index: {0}]   ;;  %s2185_s9 = inlined_call_operand.hbm [shape: f32[40,1], index: 9, kind: output, shape index: {1}]  }
   0x1   :  { %2200 = sst [smem:[#allocation32_spill]] %s2177_s1 }
   0x2   :  { %2201 = sst [smem:[#allocation33_spill]] %s2184_s8 }
   0x3   :  { %2202 = sst [smem:[#allocation34_spill]] %s2185_s9 }
   0x4   :  { %15 = vsyncpa [#allocation3], 0 }
   0x5   :  { %17 = vsyncpa [#allocation3 + $0x1], 0 }
   0x6   :  { %18 = vsyncpa [#allocation6], 0 }
   0x7   :  { %19 = vsyncpa [#allocation9], 0 }
   0x8   :  { %20 = vsyncpa [#allocation12], 0 }
   0x9   :  { %21 = vsyncpa [#allocation15], 0 }
   0xa   :  { %22 = vsyncpa [#allocation4], 0 }
   0xb   :  { %24 = vsyncpa [#allocation4 + $0x1], 0 }
   0xc   :  { %25 = vsyncpa [#allocation18], 0 }
   0xd   :  { %27 = vsyncpa [#allocation18 + $0x1], 0  ;;  %s1755_s30 = smov 0   ;;  %s1757_s10 = smov 0  }
   0xe   :  { %s1759_s11 = smov 0   ;;  %s1761_s12 = smov 0  }
   0xf LB: > { %2203 = sst [smem:[#allocation26_spill]] %s1668_s30  ;;  %s1776_s13 = sadd.s32 4294967295, %s1680_s12   ;;  %s1680_s12 = sphi %s1761_s12, %s2240_s12   ;;  %s1676_s11 = sphi %s1759_s11, %s2244_s11   ;;  %s1672_s10 = sphi %s1757_s10, %s2243_s10   ;;  %s1668_s30 = sphi %s1755_s30, %s2242_s30  }
  0x10   : > { %2204 = sst [smem:[#allocation27_spill]] %s1776_s13  ;;  %s1053_s14 = sadd.s32 4294967294, %s1680_s12  }
  0x11   : > { %s1780_s15 = sadd.s32 1, %s1680_s12   ;;  %s40_s16 = sadd.s32 1, %s1676_s11 }
  0x12   : > { %2205 = sst [smem:[#allocation28_spill]] %s1780_s15  ;;  %s37_s17 = ssub.s32 %s1680_s12, %s1780_s15 }
  0x13   : > { %p47_p0 = scmp.ne.s32.totalorder %s1676_s11, %s1672_s10  ;;  %p38_p1 = scmp.eq.s32.totalorder %s37_s17, 0 }
  0x14   : > { %p48_p2 = scmp.eq.s32.totalorder %s1680_s12, 0  ;;  %p53_p3 = scmp.ne.s32.totalorder %s1672_s10, %s1668_s30 }
  0x15   : > { %p2188_p4 = scmp.eq.s32.totalorder %s1776_s13, 0  ;;  %p224_p7 = scmp.eq.s32.totalorder %s1776_s13, 2 }
  0x16   : > { %s1792_s18 = scalar_select %p38_p1, %s1676_s11, %s40_s16  }
  0x17   : > { %p1794_p5 = por %p48_p2, %p47_p0  ;;  %p1800_p6 = por %p2188_p4, %p53_p3 }
  0x18   : > { %2206 = sst [smem:[#allocation29_spill]] %s1792_s18  ;;  %p230_p8 = scmp.eq.s32.totalorder %s1053_s14, 2 }
  0x19   : > { %s2207_s19 = scalar_select %p1794_p5, 1, 0 }
  0x1a   : > { %s2208_s20 = scalar_select %p1800_p6, 1, 0 }
  0x1b   : > { %p1054_p9 = scmp.ge.s32.totalorder %s1680_s12, 1  ;;  %p263_p10 = scmp.lt.s32.totalorder %s1680_s12, 4 }
  0x1c   : > { %p1807_p11 = por %p224_p7, %p47_p0  ;;  %p1811_p12 = por %p230_p8, %p53_p3 }
  0x1d   : > { %p1815_p13 = pnand %p1054_p9, %p263_p10  ;;  %s1682_s24 = smov [#allocation5]  }
  0x1e   : > { %s2209_s21 = scalar_select %p1807_p11, 1, 0 }
  0x1f   : > { %s2211_s22 = scalar_select %p1811_p12, 1, 0 }
  0x20   : > { %2210 = sst [smem:[#allocation30_spill]] %s2209_s21  ;;  %p1216_p1 = pneg %p1815_p13 }
  0x21   : > { %2212 = sst [smem:[#allocation31_spill]] %s2211_s22  ;;  %s275_s25 = sshll.u32 %s1682_s24, 4  ;;  %s276_s25 = int_to_ptr.vmem [resolvable:$true] %s275_s25 }
  0x22   : > { %s2213_s23 = scalar_select %p1815_p13, 1, 0 }
  0x23   : > { %p1823_p2 = pnand %p1216_p1, %p2188_p4  ;;  %s1683_s27 = smov [#allocation8]  }
  0x24   : > { %s299_s28 = sshll.u32 %s1683_s27, 4  ;;  %s2215_s1 = sld [smem:[#allocation32_spill]]  ;;  %s1827_s28 = int_to_ptr.vmem [resolvable:$true] %s299_s28 }
  0x25   : > { %p1837_p3 = pneg %p1823_p2 }
  0x2a   : > { %s1342_s16 = scalar_lea.hbm %s2215_s1, 384 }
  0x2b   : > { %p1343_p0 = scmp.ne.s32.totalorder %s2215_s1, %s1342_s16  ;;  %p1349_p9 = scmp.lt.u32.totalorder %s1342_s16, %s2215_s1 }
  0x2d   : > { %p1345_p7 = pnand %p1837_p3, %p1343_p0 }
  0x2f   : > { %p1346_p8 = pneg %p1345_p7 }
  0x31   : > { %p1351_p10 = pnand %p1349_p9, %p1346_p8 }
  0x33   : > { %1354 = shalt.err (!%p1351_p10)
}
  0x34   : > { %s1355_s29 = scalar_lea.vmem %s276_s25, 384  ;;  %p1363_p11 = scmp.lt.s32.totalorder %s276_s25, %s276_s25 }
  0x35   : > { %p1356_p1 = scmp.ne.s32.totalorder %s276_s25, %s1355_s29  ;;  %p1364_p6 = scmp.lt.s32.totalorder %s1355_s29, %s1355_s29 }
  0x37   : > { %p1358_p4 = pnand %p1356_p1, %p1837_p3  ;;  %p1365_p13 = por %p1364_p6, %p1363_p11 }
  0x39   : > { %p1359_p12 = pneg %p1358_p4 }
  0x3b   : > { %p1366_p5 = pnand %p1365_p13, %p1359_p12 }
  0x3d   : > { %1369 = shalt.err (!%p1366_p5)
}
  0x3e   : > { %s1684_s18 = smov 128   ;;  %s1685_s14 = smov 8  }
  0x3f   : > { %1219 = dma.hbm_to_vmem [thread:$0]  (!%p1823_p2), %s2215_s1, 384, %s276_s25, [#allocation6], %s1684_s18, %s1684_s18, %s1685_s14  }
  0x40   : > { %s1370_s22 = scalar_lea.hbm %s2179_s3, 1024 }
  0x41   : > { %p1371_p4 = scmp.ne.s32.totalorder %s2179_s3, %s1370_s22  ;;  %p1377_p11 = scmp.lt.u32.totalorder %s1370_s22, %s2179_s3 }
  0x43   : > { %p1373_p6 = pnand %p1371_p4, %p1837_p3 }
  0x45   : > { %p1374_p5 = pneg %p1373_p6 }
  0x47   : > { %p1379_p12 = pnand %p1377_p11, %p1374_p5 }
  0x49   : > { %1382 = shalt.err (!%p1379_p12)
}
  0x4a   : > { %s1383_s25 = scalar_lea.vmem %s1827_s28, 1024  ;;  %p1391_p8 = scmp.lt.s32.totalorder %s1827_s28, %s1827_s28 }
  0x4b   : > { %p1384_p13 = scmp.ne.s32.totalorder %s1827_s28, %s1383_s25  ;;  %p1392_p9 = scmp.lt.s32.totalorder %s1383_s25, %s1383_s25 }
  0x4d   : > { %p1386_p0 = pnand %p1384_p13, %p1837_p3  ;;  %p1393_p10 = por %p1392_p9, %p1391_p8 }
  0x4f   : > { %p1387_p7 = pneg %p1386_p0 }
  0x51   : > { %p1394_p1 = pnand %p1393_p10, %p1387_p7 }
  0x53   : > { %1397 = shalt.err (!%p1394_p1)
}
  0x54   : > { %s1686_s9 = smov 64   ;;  %s1687_s8 = smov 4  }
  0x55   : > { %1225 = dma.hbm_to_vmem [thread:$0]  (!%p1823_p2), %s2179_s3, 1024, %s1827_s28, [#allocation9], %s1686_s9, %s1686_s9, %s1687_s8  }
  0x56   : > { %s1688_s18 = smov [#allocation11]   ;;  %s1689_s15 = smov [#allocation7]  }
  0x57   : > { %s323_s14 = sshll.u32 %s1688_s18, 4  ;;  %s289_s16 = sshll.u32 %s1689_s15, 4  ;;  %s324_s14 = int_to_ptr.vmem [resolvable:$true] %s323_s14  ;;  %s290_s16 = int_to_ptr.vmem [resolvable:$true] %s289_s16 }
  0x58   : > { %s1398_s29 = scalar_lea.hbm %s2181_s5, 1024 }
  0x59   : > { %p1399_p4 = scmp.ne.s32.totalorder %s2181_s5, %s1398_s29  ;;  %p1405_p11 = scmp.lt.u32.totalorder %s1398_s29, %s2181_s5 }
  0x5b   : > { %p1401_p6 = pnand %p1399_p4, %p1837_p3 }
  0x5d   : > { %p1402_p5 = pneg %p1401_p6 }
  0x5f   : > { %p1407_p12 = pnand %p1405_p11, %p1402_p5 }
  0x61   : > { %1410 = shalt.err (!%p1407_p12)
}
  0x62   : > { %s1411_s28 = scalar_lea.vmem %s324_s14, 1024  ;;  %p1419_p8 = scmp.lt.s32.totalorder %s324_s14, %s324_s14 }
  0x63   : > { %p1412_p13 = scmp.ne.s32.totalorder %s324_s14, %s1411_s28  ;;  %p1420_p9 = scmp.lt.s32.totalorder %s1411_s28, %s1411_s28 }
  0x65   : > { %p1414_p0 = pnand %p1412_p13, %p1837_p3  ;;  %p1421_p10 = por %p1420_p9, %p1419_p8 }
  0x67   : > { %p1415_p7 = pneg %p1414_p0 }
  0x69   : > { %p1422_p1 = pnand %p1421_p10, %p1415_p7 }
  0x6b   : > { %1425 = shalt.err (!%p1422_p1)
}
  0x6c   : > { %1231 = dma.hbm_to_vmem [thread:$0]  (!%p1823_p2), %s2181_s5, 1024, %s324_s14, [#allocation12], %s1686_s9, %s1686_s9, %s1687_s8  }
  0x6d   : > { %s1426_s22 = scalar_lea.hbm %s2178_s2, 16 }
  0x6e   : > { %p1427_p4 = scmp.ne.s32.totalorder %s2178_s2, %s1426_s22  ;;  %p1433_p11 = scmp.lt.u32.totalorder %s1426_s22, %s2178_s2 }
  0x70   : > { %p1429_p6 = pnand %p1427_p4, %p1837_p3 }
  0x72   : > { %p1430_p5 = pneg %p1429_p6 }
  0x74   : > { %p1435_p12 = pnand %p1433_p11, %p1430_p5 }
  0x76   : > { %1438 = shalt.err (!%p1435_p12)
}
  0x77   : > { %s1439_s29 = scalar_lea.vmem %s290_s16, 16  ;;  %s1446_s9 = scalar_lea.vmem %s290_s16, 32 }
  0x78   : > { %p1440_p13 = scmp.ne.s32.totalorder %s290_s16, %s1439_s29  ;;  %p1447_p8 = scmp.lt.s32.totalorder %s290_s16, %s290_s16 }
  0x79   : > { %p1448_p9 = scmp.lt.s32.totalorder %s1446_s9, %s1439_s29 }
  0x7a   : > { %p1442_p0 = pnand %p1440_p13, %p1837_p3 }
  0x7b   : > { %p1449_p10 = por %p1448_p9, %p1447_p8 }
  0x7c   : > { %p1443_p7 = pneg %p1442_p0 }
  0x7e   : > { %p1450_p1 = pnand %p1449_p10, %p1443_p7 }
  0x80   : > { %1453 = shalt.err (!%p1450_p1)
}
  0x81   : > { %1222 = dma.hbm_to_vmem [thread:$0]  (!%p1823_p2), %s2178_s2, 16, %s290_s16, [#allocation6]  }
  0x82   : > { %s1690_s25 = smov [#allocation10]   ;;  %s1691_s1 = smov [#allocation13]  }
  0x83   : > { %s313_s28 = sshll.u32 %s1690_s25, 4  ;;  %s337_s30 = sshll.u32 %s1691_s1, 4  ;;  %s314_s28 = int_to_ptr.vmem [resolvable:$true] %s313_s28  ;;  %s338_s30 = int_to_ptr.vmem [resolvable:$true] %s337_s30 }
  0x84   : > { %s1454_s22 = scalar_lea.hbm %s2180_s4, 16 }
  0x85   : > { %p1455_p4 = scmp.ne.s32.totalorder %s2180_s4, %s1454_s22  ;;  %p1461_p11 = scmp.lt.u32.totalorder %s1454_s22, %s2180_s4 }
  0x87   : > { %p1457_p6 = pnand %p1455_p4, %p1837_p3 }
  0x89   : > { %p1458_p5 = pneg %p1457_p6 }
  0x8b   : > { %p1463_p12 = pnand %p1461_p11, %p1458_p5 }
  0x8d   : > { %1466 = shalt.err (!%p1463_p12)
}
  0x8e   : > { %s1467_s16 = scalar_lea.vmem %s314_s28, 16  ;;  %s1474_s29 = scalar_lea.vmem %s314_s28, 32 }
  0x8f   : > { %p1468_p13 = scmp.ne.s32.totalorder %s314_s28, %s1467_s16  ;;  %p1475_p8 = scmp.lt.s32.totalorder %s314_s28, %s314_s28 }
  0x90   : > { %p1476_p9 = scmp.lt.s32.totalorder %s1474_s29, %s1467_s16 }
  0x91   : > { %p1470_p0 = pnand %p1468_p13, %p1837_p3 }
  0x92   : > { %p1477_p10 = por %p1476_p9, %p1475_p8 }
  0x93   : > { %p1471_p7 = pneg %p1470_p0 }
  0x95   : > { %p1478_p1 = pnand %p1477_p10, %p1471_p7 }
  0x97   : > { %1481 = shalt.err (!%p1478_p1)
}
  0x98   : > { %1228 = dma.hbm_to_vmem [thread:$0]  (!%p1823_p2), %s2180_s4, 16, %s314_s28, [#allocation9]  }
  0x99   : > { %s1482_s1 = scalar_lea.hbm %s2182_s6, 16 }
  0x9a   : > { %p1483_p4 = scmp.ne.s32.totalorder %s2182_s6, %s1482_s1  ;;  %p1489_p11 = scmp.lt.u32.totalorder %s1482_s1, %s2182_s6 }
  0x9c   : > { %p1485_p6 = pnand %p1483_p4, %p1837_p3 }
  0x9e   : > { %p1486_p5 = pneg %p1485_p6 }
  0xa0   : > { %p1491_p12 = pnand %p1489_p11, %p1486_p5 }
  0xa2   : > { %1494 = shalt.err (!%p1491_p12)
}
  0xa3   : > { %s1495_s15 = scalar_lea.vmem %s338_s30, 16  ;;  %s1502_s28 = scalar_lea.vmem %s338_s30, 32 }
  0xa4   : > { %p1496_p13 = scmp.ne.s32.totalorder %s338_s30, %s1495_s15  ;;  %p1503_p8 = scmp.lt.s32.totalorder %s338_s30, %s338_s30 }
  0xa5   : > { %p1504_p9 = scmp.lt.s32.totalorder %s1502_s28, %s1495_s15 }
  0xa6   : > { %p1498_p0 = pnand %p1496_p13, %p1837_p3 }
  0xa7   : > { %p1505_p10 = por %p1504_p9, %p1503_p8 }
  0xa8   : > { %p1499_p7 = pneg %p1498_p0 }
  0xaa   : > { %p1506_p1 = pnand %p1505_p10, %p1499_p7 }
  0xac   : > { %1509 = shalt.err (!%p1506_p1)
}
  0xad   : > { %1234 = dma.hbm_to_vmem [thread:$0]  (!%p1823_p2), %s2182_s6, 16, %s338_s30, [#allocation12]  }
  0xae   : > { %s1692_s16 = smov [#allocation14]   ;;  %s1510_s14 = scalar_lea.hbm %s2183_s7, 16 }
  0xaf   : > { %s348_s29 = sshll.u32 %s1692_s16, 4  ;;  %p1511_p4 = scmp.ne.s32.totalorder %s2183_s7, %s1510_s14  ;;  %s349_s29 = int_to_ptr.vmem [resolvable:$true] %s348_s29 }
  0xb0   : > { %p1517_p11 = scmp.lt.u32.totalorder %s1510_s14, %s2183_s7 }
  0xb1   : > { %p1513_p6 = pnand %p1511_p4, %p1837_p3 }
  0xb3   : > { %p1514_p5 = pneg %p1513_p6 }
  0xb5   : > { %p1519_p12 = pnand %p1517_p11, %p1514_p5 }
  0xb7   : > { %1522 = shalt.err (!%p1519_p12)
}
  0xb8   : > { %s1523_s30 = scalar_lea.vmem %s349_s29, 16  ;;  %s1530_s22 = scalar_lea.vmem %s349_s29, 32 }
  0xb9   : > { %p1524_p13 = scmp.ne.s32.totalorder %s349_s29, %s1523_s30  ;;  %p1531_p8 = scmp.lt.s32.totalorder %s349_s29, %s349_s29 }
  0xba   : > { %p1532_p9 = scmp.lt.s32.totalorder %s1530_s22, %s1523_s30 }
  0xbb   : > { %p1526_p0 = pnand %p1524_p13, %p1837_p3 }
  0xbc   : > { %p1533_p10 = por %p1532_p9, %p1531_p8 }
  0xbd   : > { %p1527_p7 = pneg %p1526_p0 }
  0xbf   : > { %p1534_p1 = pnand %p1533_p10, %p1527_p7 }
  0xc1   : > { %1537 = shalt.err (!%p1534_p1)
}
  0xc2   : > { %1237 = dma.hbm_to_vmem [thread:$0]  (!%p1823_p2), %s2183_s7, 16, %s349_s29, [#allocation15]  }
  0xc3   : > { %p1062_p4 = scmp.ge.s32.totalorder %s1680_s12, 3 }
  0xc4   : > { %p2217_p6 = scmp.ne.s32.totalorder (!%p1062_p4), %s2207_s19, 0 }
  0xc5   : > { %355 = sbr.rel (%p1062_p4) target bundleno = 239 (0xef), region = 44 }
  0xcc   : > { %358 = sbr.rel (!%p2217_p6) target bundleno = 239 (0xef), region = 48  ;;  %s359_s24 = sand.u32 (%p2217_p6), 1, %s1676_s11  }
  0xcd   : > { %s1064_s28 = sshll.u32 (%p2217_p6), %s1680_s12, 1  ;;  %s1063_s17 = sshll.u32 (%p2217_p6), %s359_s24, 3 }
  0xce   : > { %s365_s27 = ssub.s32 (%p2217_p6), 5, %s1064_s28  ;;  %s1974_s9 = scalar_lea.sflag (%p2217_p6), [#allocation3], %s359_s24 }
  0xcf   : > { %p366_p3 = scmp.lt.s32.totalorder (%p2217_p6), %s365_s27, 2  ;;  %s363_s29 = scalar_lea.vmem (%p2217_p6), [#allocation2], %s1063_s17 }
  0xd3   : > { %s2246_s27 = smov (!%p366_p3, %s365_s27), 2 }
  0xd4   : > { %s1971_s16 = sshll.u32 %s2246_s27, 6 }
  0xd5   : > { %s370_s26 = ssub.s32 128, %s1971_s16 }
  0xd6   : > { %371 = vsyncadd %s1974_s9, %s370_s26  ;;  %p1066_p2 = scmp.ne.s32.totalorder %s1971_s16, 0  ;;  %s1124_s19 = sshll.u32 %s1680_s12, 7 }
  0xd7   : > { %s1982_s25 = scalar_lea.hbm %s2176_s0, %s1124_s19  ;;  %s376_s1 = sshll.u32 %s363_s29, 4  ;;  %s1984_s1 = int_to_ptr.vmem [resolvable:$true] %s376_s1 }
  0xd8   : > { %s1538_s13 = scalar_lea.hbm %s1982_s25, %s1971_s16  ;;  %s1542_s22 = scalar_lea.hbm %s2176_s0, 320 }
  0xd9   : > { %p1539_p5 = scmp.ne.s32.totalorder %s1982_s25, %s1538_s13  ;;  %p1543_p13 = scmp.lt.u32.totalorder %s1982_s25, %s2176_s0 }
  0xda   : > { %p1544_p0 = scmp.lt.u32.totalorder %s1542_s22, %s1538_s13  ;;  %p1546_p8 = scmp.lt.u32.totalorder %s1538_s13, %s1982_s25 }
  0xdb   : > { %p1540_p11 = pnand %p1539_p5, %p1066_p2 }
  0xdc   : > { %p1545_p7 = por %p1544_p0, %p1543_p13 }
  0xdd   : > { %p1541_p12 = pneg %p1540_p11 }
  0xde   : > { %p1547_p9 = por %p1546_p8, %p1545_p7 }
  0xe0   : > { %p1548_p10 = pnand %p1547_p9, %p1541_p12 }
  0xe2   : > { %1551 = shalt.err (!%p1548_p10)
}
  0xe3   : > { %s1552_s24 = scalar_lea.vmem %s1984_s1, %s1971_s16  ;;  %s1693_s28 = smov [#allocation2]  }
  0xe4   : > { %p1553_p1 = scmp.ne.s32.totalorder %s1984_s1, %s1552_s24  ;;  %s1556_s17 = sshll.u32 %s1693_s28, 4  ;;  %s1557_s17 = int_to_ptr.vmem [resolvable:$false] %s1556_s17 }
  0xe5   : > { %s1558_s27 = scalar_lea.vmem %s1557_s17, 256  ;;  %p1559_p3 = scmp.lt.s32.totalorder %s1984_s1, %s1557_s17 }
  0xe6   : > { %p1554_p4 = pnand %p1553_p1, %p1066_p2  ;;  %p1560_p5 = scmp.lt.s32.totalorder %s1558_s27, %s1552_s24 }
  0xe8   : > { %p1555_p6 = pneg %p1554_p4  ;;  %p1561_p11 = por %p1560_p5, %p1559_p3 }
  0xea   : > { %p1562_p13 = pnand %p1561_p11, %p1555_p6 }
  0xec   : > { %1565 = shalt.err (!%p1562_p13)
}
  0xed   : > { %s1694_s26 = smov 64   ;;  %s1695_s29 = smov 4  }
  0xee   : > { %382 = dma.hbm_to_vmem [thread:$0]  (%p1066_p2), %s1982_s25, %s1971_s16, %s1984_s1, %s1974_s9, %s1694_s26, %s1694_s26, %s1695_s29  }
  0xef PF: > { %p2218_p12 = scmp.ne.s32.totalorder %s2213_s23, 0 }
  0xf0   : > { %s2014_s19 = sand.u32 (!%p2218_p12), 1, %s1672_s10   ;;  %p2219_p0 = scmp.ne.s32.totalorder (!%p2218_p12), %s2208_s20, 0 }
  0xf1   : > { %388 = sbr.rel (%p2218_p12) target bundleno = 1470 (0x5be), region = 52  ;;  %s1071_s8 = sshll.u32 (!%p2218_p12), %s2014_s19, 3 }
  0xf2   : > { %s391_s14 = scalar_lea.sflag (!%p2218_p12), [#allocation3], %s2014_s19  ;;  %s394_s13 = scalar_lea.vmem (!%p2218_p12), [#allocation2], %s1071_s8 }
  0xf8   : > { %1639 = dma.done.wait (%p2219_p0), %s391_s14, 128  }
  0xf9   : > { %1641 = vsyncadd (%p2219_p0), %s391_s14, 4294967168  ;;  %s2220_s16 = sld [smem:[#allocation27_spill]] }
  0xff   : > { %p2221_p2 = scmp.eq.s32.totalorder %s2220_s16, 0 }
 0x101   : > { %1643 = dma.done.wait (%p2221_p2), [#allocation6], 400   ;;  %p2222_p7 = pmov %p2221_p2 }
 0x102   : > { %p2223_p8 = pmov %p2221_p2 }
 0x103   : > { %1645 = vsyncadd (%p2222_p7), [#allocation6], 4294966896 }
 0x104   : > { %1647 = dma.done.wait (%p2223_p8), [#allocation9], 1040   ;;  %p2224_p9 = pmov %p2221_p2 }
 0x105   : > { %p2225_p10 = pmov %p2221_p2 }
 0x106   : > { %1649 = vsyncadd (%p2224_p9), [#allocation9], 4294966256 }
 0x107   : > { %1651 = dma.done.wait (%p2225_p10), [#allocation12], 1040   ;;  %p2226_p1 = pmov %p2221_p2 }
 0x109   : > { %1653 = vsyncadd (%p2226_p1), [#allocation12], 4294966256  ;;  %p2227_p4 = pmov %p2226_p1 }
 0x10a   : > { %p2228_p6 = pmov %p2226_p1 }
 0x10b   : > { %1655 = dma.done.wait (%p2227_p4), [#allocation15], 16  }
 0x10c   : > { %1657 = vsyncadd (%p2228_p6), [#allocation15], 4294967280  ;;  %v1696_v0 = vmov 0   ;;  %v1697_v1 = vmov 0.0   ;;  %v1312_v2 = vld [vmem:[#allocation5 + $0x4] ss:$8 sps:$4 sm:$0xff]  }
 0x10d   : > { %546 = vmatprep.mubr.bf16.mxu0 %v1696_v0  ;;  %1145 = vmatprep.subr.bf16.mxu1 %v1697_v1  ;;  %vm507_vm0 = vcmask 1041408   ;;  %v1314_v3 = vld [vmem:[#allocation5] ss:$8 sps:$4 sm:$0xff]   ;;  %v482_v4 = vld [vmem:[#allocation5 + $0x10] sm:$0x33]  ;;  %vm503_vm1 = vcmask 162816  }
 0x10e   : > { %514 = vmatprep.subr.bf16.mxu0 %v1312_v2  ;;  %v1085_v5 = vcombine.high %v482_v4, %v482_v4  ;;  %v1084_v6 = vcombine.low %v482_v4, %v482_v4  ;;  %v1318_v7 = vld [vmem:[#allocation8] sm:$0xff]   ;;  %v1319_v9 = vld [vmem:[#allocation8 + $0x8] sm:$0xff]   ;;  %v1320_v11 = vld [vmem:[#allocation8 + $0x10] sm:$0xff]   ;;  %vm1698_vm2 = vmmov 0   ;;  %s1079_s20 = sshll.u32 %s2014_s19, 4  ;;  %vm831_vm3 = vcmask 7168  }
 0x10f   : > { %515 = vmatpush1.bf16.msra.mxu0 %v1314_v3  ;;  %1146 = vmatpush3.bf16.msra.mxu1 %v1318_v7  ;;  %v1317_v10 = vld [vmem:[%s394_s13] sm:$0xff]   ;;  %v1323_v14 = vld [vmem:[#allocation8 + $0x28] sm:$0xff]   ;;  %s2059_s23 = scalar_lea.vmem [#allocation16], %s1079_s20  ;;  %s2065_s9 = scalar_lea.vmem [#allocation17], %s1079_s20 }
 0x110   : > { %1086 = vmatprep.subr.msk.bf16.mxu0 %vm507_vm0, %v1085_v5  ;;  %v509_v8 = vsel %vm507_vm0, %v1084_v6, 0  ;;  %1147 = vmatprep.subr.bf16.mxu1 %v1697_v1  ;;  %v1321_v12 = vld [vmem:[#allocation8 + $0x18] sm:$0xff]   ;;  %v1322_v13 = vld [vmem:[#allocation8 + $0x20] sm:$0xff]   ;;  %v1324_v15 = vld [vmem:[#allocation8 + $0x30] sm:$0xff]   ;;  %s835_s25 = scalar_lea.sflag [#allocation4], %s2014_s19  ;;  %s840_s1 = scalar_lea.sflag [#allocation18], %s2014_s19 }
 0x111   : > { %v1325_v16 = vld [vmem:[#allocation8 + $0x38] sm:$0xff]   ;;  %1161 = vmatprep.mubr.msk.bf16.mxu1 %vm1698_vm2, %v1697_v1  ;;  %v1326_v17 = vld [vmem:[#allocation11] sm:$0xff]   ;;  %v1327_v18 = vld [vmem:[#allocation11 + $0x8] sm:$0xff]   ;;  %s2229_s21 = sld [smem:[#allocation30_spill]] }
 0x112   : > { %v1328_v19 = vld [vmem:[#allocation11 + $0x10] sm:$0xff]   ;;  %v1329_v20 = vld [vmem:[#allocation11 + $0x18] sm:$0xff]   ;;  %v1330_v21 = vld [vmem:[#allocation11 + $0x20] sm:$0xff]  }
 0x113   : > { %517 = vmatpush1.bf16.msra.mxu0 %v509_v8  ;;  %1148 = vmatpush3.bf16.msra.mxu1 %v1319_v9  ;;  %v1088_v22 = vld [vmem:[#allocation7] ss:$0 sm:$0xff]  ;;  %v1331_v32 = vld [vmem:[#allocation11 + $0x28] sm:$0xff]   ;;  %v1332_v33 = vld [vmem:[#allocation11 + $0x30] sm:$0xff]  }
 0x114   : > { %1165 = vmatprep.subr.bf16.mxu0 %v1697_v1  ;;  %1149 = vmatprep.subr.bf16.mxu1 %v1697_v1  ;;  %v1333_v34 = vld [vmem:[#allocation11 + $0x38] sm:$0xff]   ;;  %v1098_v47 = vld [vmem:[#allocation13] ss:$0 sm:$0xff] }
 0x115   : > { %v1097_v36 = vld [vmem:[#allocation10] ss:$0 sm:$0xff] }
 0x116   : > { %1087 = vmatmul.mubr.msk.bf16.vlgmr.msra.gmra.mrb[0].mxu0 %vm503_vm1, %v1317_v10 }
 0x117   : > { %1150 = vmatpush3.bf16.msra.mxu1 %v1320_v11  ;;  %1181 = vmatprep.mubr.msk.bf16.mxu0 %vm1698_vm2, %v1697_v1  ;;  %p2230_p3 = scmp.ne.s32.totalorder %s2229_s21, 0 }
 0x118   : > { %1151 = vmatprep.subr.bf16.mxu1 %v1697_v1  ;;  %1166 = vmatpush3.bf16.msra.mxu0 %v1326_v17  ;;  %s2231_s30 = sld [smem:[#allocation27_spill]] (%p2230_p3) }
 0x119   : > { %1167 = vmatprep.subr.bf16.mxu0 %v1697_v1 }
 0x11b   : > { %1152 = vmatpush3.bf16.msra.mxu1 %v1321_v12 }
 0x11c   : > { %1153 = vmatprep.subr.bf16.mxu1 %v1697_v1  ;;  %1168 = vmatpush3.bf16.msra.mxu0 %v1327_v18 }
 0x11d   : > { %1169 = vmatprep.subr.bf16.mxu0 %v1697_v1 }
 0x11e   : > { %s1110_s22 = sshll.u32 (%p2230_p3), %s2231_s30, 1 }
 0x11f   : > { %1154 = vmatpush3.bf16.msra.mxu1 %v1322_v13  ;;  %s848_s18 = ssub.s32 (%p2230_p3), 5, %s1110_s22 }
 0x120   : > { %1155 = vmatprep.subr.bf16.mxu1 %v1697_v1  ;;  %1170 = vmatpush3.bf16.msra.mxu0 %v1328_v19  ;;  %p849_p5 = scmp.lt.s32.totalorder (%p2230_p3), %s848_s18, 2 }
 0x121   : > { %1171 = vmatprep.subr.bf16.mxu0 %v1697_v1 }
 0x123   : > { %1156 = vmatpush3.bf16.msra.mxu1 %v1323_v14 }
 0x124   : > { %1157 = vmatprep.subr.bf16.mxu1 %v1697_v1  ;;  %1172 = vmatpush3.bf16.msra.mxu0 %v1329_v20 }
 0x125   : > { %1173 = vmatprep.subr.bf16.mxu0 %v1697_v1 }
 0x127   : > { %1158 = vmatpush3.bf16.msra.mxu1 %v1324_v15 }
 0x128   : > { %1159 = vmatprep.subr.bf16.mxu1 %v1697_v1  ;;  %1174 = vmatpush3.bf16.msra.mxu0 %v1330_v21 }
 0x129   : > { %1175 = vmatprep.subr.bf16.mxu0 %v1697_v1 }
 0x12b   : > { %1160 = vmatpush3.bf16.msra.mxu1 %v1325_v16 }
 0x12c   : > { %1176 = vmatpush3.bf16.msra.mxu0 %v1331_v32 }
 0x12d   : > { %1177 = vmatprep.subr.bf16.mxu0 %v1697_v1 }
 0x130   : > { %1178 = vmatpush3.bf16.msra.mxu0 %v1332_v33 }
 0x131   : > { %1179 = vmatprep.subr.bf16.mxu0 %v1697_v1  ;;  %v1107_v1 = vld [vmem:[#allocation14] ss:$0 sm:$0xff] }
 0x134   : > { %1180 = vmatpush3.bf16.msra.mxu0 %v1333_v34 }
 0x1e9   : > { %v548_v23 = vpop.f32.mrb[0].mxu0 }
 0x1ea   : > { %v564_v24 = vadd.f32 %v1088_v22, %v548_v23  ;;  %v550_v25 = vpop.f32.mrb[1].mxu0 }
 0x1eb   : > { %v552_v26 = vpop.f32.mrb[2].mxu0 }
 0x1ec   : > { %v565_v27 = vadd.f32 %v1088_v22, %v552_v26  ;;  %v554_v28 = vpop.f32.mrb[3].mxu0  ;;  %v566_v29 = vmax.f32 %v564_v24, 0.0 }
 0x1ee   : > { %v567_v30 = vmax.f32 %v565_v27, 0.0 }
 0x1f0   : > { %v568_v31 = vpack.c.bf16 %v567_v30, %v566_v29 }
 0x1f2   : > { %1162 = vmatmul.mubr.bf16.vlgmr.msra.gmra.mrb[0].mxu1 %v568_v31 }
 0x2c5   : > { %v667_v35 = vpop.f32.mrb[0].mxu1 }
 0x2c6   : > { %v668_v37 = vadd.f32 %v667_v35, %v550_v25  ;;  %v1163_v38 = vpop.f32.mrb[1].mxu1 }
 0x2c7   : > { %v670_v39 = vpop.f32.mrb[2].mxu1 }
 0x2c8   : > { %v681_v40 = vadd.f32 %v1097_v36, %v668_v37  ;;  %v671_v41 = vadd.f32 %v670_v39, %v554_v28  ;;  %v1164_v42 = vpop.f32.mrb[3].mxu1 }
 0x2ca   : > { %v682_v43 = vadd.f32 %v1097_v36, %v671_v41  ;;  %v683_v44 = vmax.f32 %v681_v40, 0.0 }
 0x2cc   : > { %v684_v45 = vmax.f32 %v682_v43, 0.0 }
 0x2ce   : > { %v685_v46 = vpack.c.bf16 %v684_v45, %v683_v44 }
 0x2d0   : > { %1182 = vmatmul.mubr.bf16.vlgmr.msra.gmra.mrb[4].mxu0 %v685_v46 }
 0x3a3   : > { %v791_v48 = vpop.f32.mrb[4].mxu0 }
 0x3a4   : > { %v792_v49 = vadd.f32 %v1098_v47, %v791_v48  ;;  %v1183_v50 = vpop.f32.mrb[5].mxu0 }
 0x3a5   : > { %v794_v51 = vpop.f32.mrb[6].mxu0 }
 0x3a6   : > { %798 = vst [vmem:[%s2059_s23] sm:$0xff] %v792_v49  ;;  %v795_v52 = vadd.f32 %v1098_v47, %v794_v51  ;;  %800 = vmax.xlane.f32.xlu0 %v792_v49  ;;  %v1184_v53 = vpop.f32.mrb[7].mxu0 }
 0x3a8   : > { %799 = vst [vmem:[%s2059_s23 + $0x8] sm:$0xff] %v795_v52 }
 0x3aa   : > { %802 = vmax.xlane.f32.xlu0 %v795_v52 }
 0x433   : > { %v801_v54 = vpop.xlane.xlu0 %800 }
 0x434   : > { %v804_v55 = vsub.f32 %v792_v49, %v801_v54 }
 0x436   : > { %v806_v56 = vmul.f32 1.442695, %v804_v55 }
 0x437   : > { %v803_v57 = vpop.xlane.xlu0 %802 }
 0x438   : > { %1334 = vpow2.f32 %v806_v56  ;;  %v805_v58 = vsub.f32 %v795_v52, %v803_v57 }
 0x43a   : > { %v808_v59 = vmul.f32 1.442695, %v805_v58 }
 0x43c   : > { %1336 = vpow2.f32 %v808_v59 }
 0x442   : > { %v1335_v60 = vpop.eup %1334 }
 0x443   : > { %810 = vadd.xlane.f32.xlu1 %v1335_v60 }
 0x446   : > { %v1337_v61 = vpop.eup %1336 }
 0x447   : > { %812 = vadd.xlane.f32.xlu1 %v1337_v61 }
 0x4d0   : > { %v811_v62 = vpop.xlane.xlu1 %810 }
 0x4d1   : > { %1338 = vrcp.f32 %v811_v62 }
 0x4d4   : > { %v813_v63 = vpop.xlane.xlu1 %812 }
 0x4d5   : > { %1340 = vrcp.f32 %v813_v63 }
 0x4db   : > { %v1339_v0 = vpop.eup %1338 }
 0x4dc   : > { %v816_v2 = vmul.f32 %v1339_v0, %v1335_v60 }
 0x4de   : > { %v825_v3 = vmul.f32 %v1107_v1, %v816_v2 }
 0x4df   : > { %v1341_v4 = vpop.eup %1340 }
 0x4e0   : > { %827 = vadd.xlane.f32.xlu0 %v825_v3  ;;  %v817_v5 = vmul.f32 %v1341_v4, %v1337_v61 }
 0x4e2   : > { %v826_v6 = vmul.f32 %v1107_v1, %v817_v5 }
 0x4e4   : > { %829 = vadd.xlane.f32.xlu1 %v826_v6 }
 0x56c   : > { %846 = sbr.rel (!%p2230_p3) target bundleno = 1424 (0x590), region = 88 }
 0x56d   : > { %v828_v7 = vpop.xlane.xlu0 %827 }
 0x56e   : > { %832 = vst.msk [vmem:[%s2065_s9] sm:$0xff] %vm831_vm3, %v828_v7 }
 0x571   : > { %v830_v8 = vpop.xlane.xlu1 %829 }
 0x572   : > { %833 = vst.msk [vmem:[%s2065_s9 + $0x8] sm:$0xff] %vm831_vm3, %v830_v8 }
 0x573   : > { %s2248_s18 = smov (!%p849_p5, %s848_s18), 2 }
 0x574   : > { %s2074_s15 = sshll.u32 %s2248_s18, 7 }
 0x575   : > { %s853_s24 = ssub.s32 256, %s2074_s15 }
 0x576   : > { %854 = vsyncadd %s835_s25, %s853_s24  ;;  %p1112_p11 = scmp.ne.s32.totalorder %s2074_s15, 0  ;;  %s1125_s28 = sshll.u32 %s2231_s30, 8 }
 0x577   : > { %s2232_s26 = sld [smem:[#allocation33_spill]]  ;;  %s859_s8 = sshll.u32 %s2059_s23, 4  ;;  %s2087_s8 = int_to_ptr.vmem [resolvable:$true] %s859_s8 }
 0x578   : > { %s1566_s14 = scalar_lea.vmem %s2087_s8, %s2074_s15  ;;  %s1699_s13 = smov [#allocation16]  }
 0x579   : > { %p1567_p13 = scmp.ne.s32.totalorder %s2087_s8, %s1566_s14  ;;  %s1570_s16 = sshll.u32 %s1699_s13, 4  ;;  %s1571_s16 = int_to_ptr.vmem [resolvable:$false] %s1570_s16 }
 0x57a   : > { %s1572_s20 = scalar_lea.vmem %s1571_s16, 512  ;;  %p1573_p2 = scmp.lt.s32.totalorder %s2087_s8, %s1571_s16 }
 0x57b   : > { %p1568_p12 = pnand %p1567_p13, %p1112_p11  ;;  %p1574_p7 = scmp.lt.s32.totalorder %s1572_s20, %s1566_s14 }
 0x57d   : > { %s2084_s29 = scalar_lea.hbm %s2232_s26, %s1125_s28  ;;  %p1569_p0 = pneg %p1568_p12 }
 0x57e   : > { %p1575_p8 = por %p1574_p7, %p1573_p2 }
 0x580   : > { %p1576_p9 = pnand %p1575_p8, %p1569_p0 }
 0x582   : > { %1579 = shalt.err (!%p1576_p9)
}
 0x583   : > { %s1580_s23 = scalar_lea.hbm %s2084_s29, %s2074_s15  ;;  %s1584_s22 = scalar_lea.hbm %s2232_s26, 640 }
 0x584   : > { %p1581_p10 = scmp.ne.s32.totalorder %s2084_s29, %s1580_s23  ;;  %p1585_p6 = scmp.lt.u32.totalorder %s2084_s29, %s2232_s26 }
 0x585   : > { %p1586_p3 = scmp.lt.u32.totalorder %s1584_s22, %s1580_s23  ;;  %p1588_p13 = scmp.lt.u32.totalorder %s1580_s23, %s2084_s29 }
 0x586   : > { %p1582_p1 = pnand %p1581_p10, %p1112_p11 }
 0x587   : > { %p1587_p5 = por %p1586_p3, %p1585_p6 }
 0x588   : > { %p1583_p4 = pneg %p1582_p1 }
 0x589   : > { %p1589_p12 = por %p1588_p13, %p1587_p5 }
 0x58b   : > { %p1590_p0 = pnand %p1589_p12, %p1583_p4 }
 0x58d   : > { %1593 = shalt.err (!%p1590_p0)
}
 0x58e   : > { %s1700_s28 = smov 128   ;;  %s1701_s17 = smov 8  }
 0x58f   : > { %865 = dma.vmem_to_hbm [thread:$0]  (%p1112_p11), %s2087_s8, %s2074_s15, %s2084_s29, %s835_s25, %s1700_s28, %s1700_s28, %s1701_s17  }
 0x590 PF: > { %s2233_s27 = sld [smem:[#allocation30_spill]] }
 0x596   : > { %p2234_p2 = scmp.ne.s32.totalorder %s2233_s27, 0 }
 0x597   : > { %s2235_s14 = sld [smem:[#allocation27_spill]] (%p2234_p2) }
 0x598   : > { %868 = sbr.rel (!%p2234_p2) target bundleno = 1470 (0x5be), region = 92 }
 0x59d   : > { %s1116_s13 = sshll.u32 (%p2234_p2), %s2235_s14, 1 }
 0x59e   : > { %s870_s16 = ssub.s32 (%p2234_p2), 5, %s1116_s13 }
 0x59f   : > { %p871_p7 = scmp.lt.s32.totalorder %s870_s16, 2 }
 0x5a1   : > { %s2250_s16 = smov (!%p871_p7, %s870_s16), 2 }
 0x5a2   : > { %s2118_s20 = sshll.u32 %s2250_s16, 7 }
 0x5a3   : > { %s875_s23 = ssub.s32 256, %s2118_s20 }
 0x5a4   : > { %876 = vsyncadd %s840_s1, %s875_s23  ;;  %p1118_p11 = scmp.ne.s32.totalorder %s2118_s20, 0  ;;  %s1126_s25 = sshll.u32 %s2235_s14, 8 }
 0x5a5   : > { %s2236_s8 = sld [smem:[#allocation34_spill]]  ;;  %s881_s30 = sshll.u32 %s2065_s9, 4  ;;  %s2131_s30 = int_to_ptr.vmem [resolvable:$true] %s881_s30 }
 0x5a6   : > { %s1594_s22 = scalar_lea.vmem %s2131_s30, %s2118_s20  ;;  %s1702_s18 = smov [#allocation17]  }
 0x5a7   : > { %p1595_p8 = scmp.ne.s32.totalorder %s2131_s30, %s1594_s22  ;;  %s1598_s24 = sshll.u32 %s1702_s18, 4  ;;  %s1599_s24 = int_to_ptr.vmem [resolvable:$false] %s1598_s24 }
 0x5a8   : > { %s1600_s28 = scalar_lea.vmem %s1599_s24, 512  ;;  %p1601_p1 = scmp.lt.s32.totalorder %s2131_s30, %s1599_s24 }
 0x5a9   : > { %p1596_p9 = pnand %p1595_p8, %p1118_p11  ;;  %p1602_p4 = scmp.lt.s32.totalorder %s1600_s28, %s1594_s22 }
 0x5ab   : > { %s2128_s21 = scalar_lea.hbm %s2236_s8, %s1126_s25  ;;  %p1597_p10 = pneg %p1596_p9 }
 0x5ac   : > { %p1603_p6 = por %p1602_p4, %p1601_p1 }
 0x5ae   : > { %p1604_p3 = pnand %p1603_p6, %p1597_p10 }
 0x5b0   : > { %1607 = shalt.err (!%p1604_p3)
}
 0x5b1   : > { %s1608_s9 = scalar_lea.hbm %s2128_s21, %s2118_s20  ;;  %s1612_s14 = scalar_lea.hbm %s2236_s8, 640 }
 0x5b2   : > { %p1609_p5 = scmp.ne.s32.totalorder %s2128_s21, %s1608_s9  ;;  %p1613_p0 = scmp.lt.u32.totalorder %s2128_s21, %s2236_s8 }
 0x5b3   : > { %p1614_p2 = scmp.lt.u32.totalorder %s1612_s14, %s1608_s9  ;;  %p1616_p8 = scmp.lt.u32.totalorder %s1608_s9, %s2128_s21 }
 0x5b4   : > { %p1610_p13 = pnand %p1609_p5, %p1118_p11 }
 0x5b5   : > { %p1615_p7 = por %p1614_p2, %p1613_p0 }
 0x5b6   : > { %p1611_p12 = pneg %p1610_p13 }
 0x5b7   : > { %p1617_p9 = por %p1616_p8, %p1615_p7 }
 0x5b9   : > { %p1618_p10 = pnand %p1617_p9, %p1611_p12 }
 0x5bb   : > { %1621 = shalt.err (!%p1618_p10)
}
 0x5bc   : > { %s1703_s23 = smov 128   ;;  %s1704_s25 = smov 8  }
 0x5bd   : > { %887 = dma.vmem_to_hbm [thread:$0]  (%p1118_p11), %s2131_s30, %s2118_s20, %s2128_s21, %s840_s1, %s1703_s23, %s1703_s23, %s1704_s25  }
 0x5be PF: > { %s2237_s15 = sld [smem:[#allocation26_spill]]  ;;  %s2238_s29 = sld [smem:[#allocation31_spill]] }
 0x5bf   : > { %p1259_p1 = scmp.ge.s32.totalorder %s1680_s12, 2 }
 0x5c4   : > { %s896_s22 = sand.u32 1, %s2237_s15   ;;  %p2239_p4 = scmp.ne.s32.totalorder %s2238_s29, 0 }
 0x5c5   : > { %s897_s18 = scalar_lea.sflag [#allocation4], %s896_s22 }
 0x5c6   : > { %p1239_p6 = pnand %p1259_p1, %p2239_p4 }
 0x5c8   : > { %1659 = dma.done.wait (!%p1239_p6), %s897_s18, 256  }
 0x5c9   : > { %1661 = vsyncadd (!%p1239_p6), %s897_s18, 4294967040  ;;  %s906_s24 = scalar_lea.sflag [#allocation18], %s896_s22 }
 0x5ca   : > { %1663 = dma.done.wait (!%p1239_p6), %s906_s24, 256  }
 0x5cb   : > { %1665 = vsyncadd (!%p1239_p6), %s906_s24, 4294967040  ;;  %s2240_s12 = sld [smem:[#allocation28_spill]]  ;;  %s2241_s19 = sld [smem:[#allocation29_spill]] }
 0x5cc   : > { %s2242_s30 = smov %s1672_s10  ;;  %s2243_s10 = smov %s1676_s11 }
 0x5d1   : > { %p30_p11 = scmp.ge.s32.totalorder %s2240_s12, 5   ;;  %s2244_s11 = smov %s2241_s19 }
 0x5d3   :  { %32 = sbr.rel (!%p30_p11) target bundleno = 15 (0xf), region = 142 }
 0x5da   :  { %911 = vsyncpa [#allocation3], 1 }
 0x5db   :  { %913 = vsyncpa [#allocation3 + $0x1], 1 }
 0x5dc   :  { %914 = vsyncpa [#allocation6], 1 }
 0x5dd   :  { %915 = vsyncpa [#allocation9], 1 }
 0x5de   :  { %916 = vsyncpa [#allocation12], 1 }
 0x5df   :  { %917 = vsyncpa [#allocation15], 1 }
 0x5e0   :  { %918 = vsyncpa [#allocation4], 1 }
 0x5e1   :  { %920 = vsyncpa [#allocation4 + $0x1], 1 }
 0x5e2   :  { %921 = vsyncpa [#allocation18], 1 }
 0x5e3   :  { %923 = vsyncpa [#allocation18 + $0x1], 1 }

</bundles_post_ra>
